<compile_context>
chip_gen: v6e
topology: v6e:2x2x1
jax: 0.10.0
libtpu: 0.0.40
codegen_flags: <defaults>
</compile_context>

<pallas_src>
import jax
import jax.numpy as jnp
from jax.experimental import pallas as pl
from jax.experimental.pallas import tpu as pltpu

EPS = 1e-5


def _instance_norm_rows(y):
    """InstanceNorm1d (affine=False): per-channel row over nodes, single-pass mean/variance."""
    m = jnp.mean(y, axis=-1, keepdims=True)
    e2 = jnp.mean(y * y, axis=-1, keepdims=True)
    v = e2 - m * m
    return (y - m) * jax.lax.rsqrt(v + EPS)


def _make_kernel(layer_dims):
    """Fully fused per-sample forward: all blocks + residual norm + final PReLU in one body."""
    num_layers = len(layer_dims)

    def kernel(*refs):
        x_ref, adj_ref = refs[0], refs[1]
        layer_refs = refs[2:2 + 3 * num_layers]
        alphas_ref = refs[2 + 3 * num_layers]      # SMEM (num_layers,) PReLU parameters
        out_ref = refs[3 + 3 * num_layers]

        adj = adj_ref[...]                         # (L, L) bf16 edge counts (exact small ints)
        h0 = x_ref[0]                              # (C0, L) f32, this sample -- also the residual
        h = h0

        for i, (c_in, c_out) in enumerate(layer_dims):   # depth is tiny -> static unroll
            ws = layer_refs[3 * i][...]            # (c_out, c_in) bf16
            wo = layer_refs[3 * i + 1][...]        # (c_out, c_in) bf16
            bias = layer_refs[3 * i + 2][...]      # (c_out, L) f32 == outer(b_other, in_degree)

            hb = h.astype(jnp.bfloat16)            # one bf16 cast per layer, reused by both dots
            y = jnp.dot(ws, hb, preferred_element_type=jnp.float32)          # conv_self
            if c_in <= c_out:
                # Aggregate on the (narrower) input side: W_other @ (h @ A).
                ha = jnp.dot(hb, adj, preferred_element_type=jnp.float32)
                y += jnp.dot(wo, ha.astype(jnp.bfloat16),
                             preferred_element_type=jnp.float32)
            else:
                # Down-projection: channel-mix first, aggregate on the (narrower) output side.
                yo = jnp.dot(wo, hb, preferred_element_type=jnp.float32)
                y += jnp.dot(yo.astype(jnp.bfloat16), adj,
                             preferred_element_type=jnp.float32)
            y += bias                              # b_other*deg (b_self cancels under InstanceNorm)

            y = _instance_norm_rows(y)

            if i < num_layers - 1:
                a = alphas_ref[i]                  # hidden-block PReLU
                h = jnp.where(y >= 0, y, a * y)
            else:
                y = y + _instance_norm_rows(h0)    # + InstanceNorm(residual)
                a = alphas_ref[num_layers - 1]     # final PReLU
                out_ref[0] = jnp.where(y >= 0, y, a * y)

    return kernel


def init_residual_graph_convolution(layer_params, alphas, alpha_last, adj):
    """One-time model-init preprocessing; nothing here runs in the per-forward path.

    layer_params : [(w_self, b_self, w_other, b_other), ...]  hidden blocks ..., last block
    adj          : (L, L) f32 counts, adj[j, l] = #edges with gather_index==j, reduce_index==l
    """
    deg = jnp.sum(adj, axis=0)                     # in-degree per target node
    # bf16 represents integers exactly only up to 256 -- guard the exactness assumption.
    assert float(jnp.max(adj)) <= 256.0 and float(jnp.max(deg)) <= 256.0
    adj_bf16 = adj.astype(jnp.bfloat16)

    flat, layer_dims = [], []
    for (ws, bs, wo, bo) in layer_params:
        layer_dims.append((ws.shape[1], ws.shape[0]))
        # b_self is a per-(sample,channel) constant and is exactly removed by the following
        # InstanceNorm mean subtraction -> dropped. b_other reaches node l scaled by deg[l].
        flat.append(ws.astype(jnp.bfloat16))
        flat.append(wo.astype(jnp.bfloat16))
        flat.append(jnp.outer(bo, deg).astype(jnp.float32))
    alphas_arr = jnp.stack([jnp.asarray(a, jnp.float32)
                            for a in (list(alphas) + [alpha_last])])
    return adj_bf16, tuple(flat), alphas_arr, tuple(layer_dims)


def build_forward(layer_dims, N, C0, L):
    """Build the fused forward: one pallas_call, grid over the batch (parallel -> v7x 2 TCs)."""
    C_last = layer_dims[-1][1]

    in_specs = [
        pl.BlockSpec((1, C0, L), lambda n: (n, 0, 0)),    # per-sample feature block
        pl.BlockSpec((L, L), lambda n: (0, 0)),           # adjacency, resident across grid steps
    ]
    for (c_in, c_out) in layer_dims:
        in_specs += [
            pl.BlockSpec((c_out, c_in), lambda n: (0, 0)),
            pl.BlockSpec((c_out, c_in), lambda n: (0, 0)),
            pl.BlockSpec((c_out, L), lambda n: (0, 0)),
        ]
    in_specs.append(pl.BlockSpec(memory_space=pltpu.MemorySpace.SMEM))   # PReLU alphas

    call = pl.pallas_call(
        _make_kernel(layer_dims),
        out_shape=jax.ShapeDtypeStruct((N, C_last, L), jnp.float32),
        grid=(N,),
        in_specs=in_specs,
        out_specs=pl.BlockSpec((1, C_last, L), lambda n: (n, 0, 0)),
        compiler_params=pltpu.CompilerParams(dimension_semantics=("parallel",)),
    )

    @jax.jit
    def forward(x, adj_bf16, flat_params, alphas_arr):
        # NCL layout in, NCL layout out -- no transposes or reshapes in the forward path.
        return call(x, adj_bf16, *flat_params, alphas_arr)

    return forward


# ----------------------------- pure-JAX reference -----------------------------

def _instance_norm_ref(y):
    m = jnp.mean(y, axis=-1, keepdims=True)
    v = jnp.mean(jnp.square(y - m), axis=-1, keepdims=True)
    return (y - m) * jax.lax.rsqrt(v + EPS)


def _graph_conv_ref(x, w_self, b_self, w_other, b_other, reduce_index, gather_index):
    # Matmul inputs cast to bf16 (f32 accumulation) to mirror the kernel's MXU input rounding;
    # the gather + index_add aggregation itself is exact f32, exactly as in the module.
    xb = x.astype(jnp.bfloat16)
    y_self = jnp.einsum('oc,ncl->nol', w_self.astype(jnp.bfloat16), xb,
                        preferred_element_type=jnp.float32) + b_self[None, :, None]
    y_other = jnp.einsum('oc,ncl->nol', w_other.astype(jnp.bfloat16), xb,
                         preferred_element_type=jnp.float32) + b_other[None, :, None]
    gathered = y_other[..., gather_index]
    out = jnp.zeros_like(y_self).at[..., reduce_index].add(gathered)
    return out + y_self


def _prelu_ref(x, a):
    return jnp.where(x >= 0, x, a * x)


def residual_graph_convolution_ref(x, layer_params, alphas, alpha_last,
                                   reduce_index, gather_index):
    residual = x
    h = x
    for (ws, bs, wo, bo), a in zip(layer_params[:-1], alphas):
        h = _prelu_ref(_instance_norm_ref(
            _graph_conv_ref(h, ws, bs, wo, bo, reduce_index, gather_index)), a)
    ws, bs, wo, bo = layer_params[-1]
    h = _instance_norm_ref(
        _graph_conv_ref(h, ws, bs, wo, bo, reduce_index, gather_index))
    return _prelu_ref(h + _instance_norm_ref(residual), alpha_last)


# ----------------------------------- main -------------------------------------

if __name__ == "__main__":
    key = jax.random.PRNGKey(0)
    keys = jax.random.split(key, 16)

    N, L, E = 2, 128, 256               # batch, nodes (last dim of NCL), edges
    channels = [8, 16, 8]               # channels[0] == channels[-1] (residual requirement)

    x = jax.random.normal(keys[0], (N, channels[0], L), jnp.float32)
    reduce_index = jax.random.randint(keys[1], (E,), 0, L)
    gather_index = jax.random.randint(keys[2], (E,), 0, L)

    # Deterministic synthetic parameters (Conv1d 1x1 weights -> (C_out, C_in)).
    def conv_params(k, cin, cout):
        k1, k2 = jax.random.split(k)
        w = jax.random.normal(k1, (cout, cin), jnp.float32) * 0.25
        b = jax.random.normal(k2, (cout,), jnp.float32) * 0.1
        return w, b

    layer_params = []
    kidx = 3
    for cin, cout in zip(channels[:-1], channels[1:]):
        ws, bs = conv_params(keys[kidx], cin, cout); kidx += 1
        wo, bo = conv_params(keys[kidx], cin, cout); kidx += 1
        layer_params.append((ws, bs, wo, bo))

    # PReLU parameters (PyTorch default init 0.25, single shared parameter each).
    alphas = [jnp.float32(0.25) for _ in range(len(channels) - 2)]
    alpha_last = jnp.float32(0.25)

    # Dense adjacency counts so gather + index_add becomes an exact matmul.
    adj = jnp.zeros((L, L), jnp.float32).at[gather_index, reduce_index].add(1.0)

    # --- model init (one time): precompute everything the forward needs ---
    adj_bf16, flat_params, alphas_arr, layer_dims = init_residual_graph_convolution(
        layer_params, alphas, alpha_last, adj)
    forward = build_forward(layer_dims, N, channels[0], L)

    # --- forward: a single fused pallas_call ---
    out = forward(x, adj_bf16, flat_params, alphas_arr)
    out = jax.block_until_ready(out)

    ref = residual_graph_convolution_ref(x, layer_params, alphas, alpha_last,
                                         reduce_index, gather_index)
    assert out.shape == (N, channels[-1], L)
    max_err = float(jnp.max(jnp.abs(out - ref)))
    # Tolerance covers bf16 MXU input rounding (both paths use bf16 matmul inputs, f32 accum).
    assert jnp.allclose(out, ref, atol=2e-2, rtol=2e-2), max_err

    print("KERNEL_OK")
</pallas_src>

<mosaic_0001>
module attributes {stable_mosaic.version = 11 : i64} {
  func.func @kernel(%arg0: i32, %arg1: memref<1x8x128xf32, #tpu.memory_space<vmem>>, %arg2: memref<128x128xbf16, #tpu.memory_space<vmem>>, %arg3: memref<16x8xbf16, #tpu.memory_space<vmem>>, %arg4: memref<16x8xbf16, #tpu.memory_space<vmem>>, %arg5: memref<16x128xf32, #tpu.memory_space<vmem>>, %arg6: memref<8x16xbf16, #tpu.memory_space<vmem>>, %arg7: memref<8x16xbf16, #tpu.memory_space<vmem>>, %arg8: memref<8x128xf32, #tpu.memory_space<vmem>>, %arg9: memref<2xf32, #tpu.memory_space<smem>>, %arg10: memref<1x8x128xf32, #tpu.memory_space<vmem>>) attributes {dimension_semantics = [#tpu.dimension_semantics<parallel>], iteration_bounds = array<i64: 2>, scalar_prefetch = 0 : i64, scratch_operands = 0 : i64, tpu.core_type = #tpu.core_type<tc>, window_params = [{transform_indices = @transform_0, window_bounds = array<i64: 1, 8, 128>}, {pipeline_mode = #tpu.pipeline_mode<synchronous>, transform_indices = @transform_1, window_bounds = array<i64: 128, 128>}, {pipeline_mode = #tpu.pipeline_mode<synchronous>, transform_indices = @transform_2, window_bounds = array<i64: 16, 8>}, {pipeline_mode = #tpu.pipeline_mode<synchronous>, transform_indices = @transform_3, window_bounds = array<i64: 16, 8>}, {pipeline_mode = #tpu.pipeline_mode<synchronous>, transform_indices = @transform_4, window_bounds = array<i64: 16, 128>}, {pipeline_mode = #tpu.pipeline_mode<synchronous>, transform_indices = @transform_5, window_bounds = array<i64: 8, 16>}, {pipeline_mode = #tpu.pipeline_mode<synchronous>, transform_indices = @transform_6, window_bounds = array<i64: 8, 16>}, {pipeline_mode = #tpu.pipeline_mode<synchronous>, transform_indices = @transform_7, window_bounds = array<i64: 8, 128>}, {transform_indices = @transform_8, window_bounds = array<i64: 2>}, {transform_indices = @transform_9, window_bounds = array<i64: 1, 8, 128>}]} {
    %c0 = arith.constant 0 : index
    %c0_0 = arith.constant 0 : index
    %0 = vector.load %arg2[%c0, %c0_0] : memref<128x128xbf16, #tpu.memory_space<vmem>>, vector<128x128xbf16>
    %c0_1 = arith.constant 0 : index
    %c0_2 = arith.constant 0 : index
    %c0_3 = arith.constant 0 : index
    %1 = vector.load %arg1[%c0_1, %c0_2, %c0_3] : memref<1x8x128xf32, #tpu.memory_space<vmem>>, vector<1x8x128xf32>
    %2 = vector.shape_cast %1 : vector<1x8x128xf32> to vector<8x128xf32>
    %c0_4 = arith.constant 0 : index
    %c0_5 = arith.constant 0 : index
    %3 = vector.load %arg3[%c0_4, %c0_5] : memref<16x8xbf16, #tpu.memory_space<vmem>>, vector<16x8xbf16>
    %c0_6 = arith.constant 0 : index
    %c0_7 = arith.constant 0 : index
    %4 = vector.load %arg4[%c0_6, %c0_7] : memref<16x8xbf16, #tpu.memory_space<vmem>>, vector<16x8xbf16>
    %c0_8 = arith.constant 0 : index
    %c0_9 = arith.constant 0 : index
    %5 = vector.load %arg5[%c0_8, %c0_9] : memref<16x128xf32, #tpu.memory_space<vmem>>, vector<16x128xf32>
    %6 = arith.truncf %2 : vector<8x128xf32> to vector<8x128xbf16>
    %cst = arith.constant dense<0.000000e+00> : vector<16x128xf32>
    %7 = tpu.matmul %3, %6, %cst {dimension_numbers = #tpu.dot_dimension_numbers<[1], [0], [0], [1], [0, 0, 1, 1], [], []>} : vector<16x8xbf16>, vector<8x128xbf16>, vector<16x128xf32> -> vector<16x128xf32>
    %cst_10 = arith.constant dense<0.000000e+00> : vector<8x128xf32>
    %8 = tpu.matmul %6, %0, %cst_10 {dimension_numbers = #tpu.dot_dimension_numbers<[1], [0], [0], [1], [0, 0, 1, 1], [], []>} : vector<8x128xbf16>, vector<128x128xbf16>, vector<8x128xf32> -> vector<8x128xf32>
    %9 = arith.truncf %8 : vector<8x128xf32> to vector<8x128xbf16>
    %cst_11 = arith.constant dense<0.000000e+00> : vector<16x128xf32>
    %10 = tpu.matmul %4, %9, %cst_11 {dimension_numbers = #tpu.dot_dimension_numbers<[1], [0], [0], [1], [0, 0, 1, 1], [], []>} : vector<16x8xbf16>, vector<8x128xbf16>, vector<16x128xf32> -> vector<16x128xf32>
    %11 = arith.addf %7, %10 : vector<16x128xf32>
    %12 = arith.addf %11, %5 : vector<16x128xf32>
    %cst_12 = arith.constant dense<0.000000e+00> : vector<16xf32>
    %13 = vector.multi_reduction <add>, %12, %cst_12 [1] : vector<16x128xf32> to vector<16xf32>
    %14 = vector.shape_cast %13 : vector<16xf32> to vector<16x1xf32>
    %cst_13 = arith.constant 1.280000e+02 : f32
    %15 = vector.broadcast %cst_13 : f32 to vector<16x1xf32>
    %16 = arith.divf %14, %15 : vector<16x1xf32>
    %17 = arith.mulf %12, %12 : vector<16x128xf32>
    %cst_14 = arith.constant dense<0.000000e+00> : vector<16xf32>
    %18 = vector.multi_reduction <add>, %17, %cst_14 [1] : vector<16x128xf32> to vector<16xf32>
    %19 = vector.shape_cast %18 : vector<16xf32> to vector<16x1xf32>
    %cst_15 = arith.constant 1.280000e+02 : f32
    %20 = vector.broadcast %cst_15 : f32 to vector<16x1xf32>
    %21 = arith.divf %19, %20 : vector<16x1xf32>
    %22 = arith.mulf %16, %16 : vector<16x1xf32>
    %23 = arith.subf %21, %22 : vector<16x1xf32>
    %24 = vector.broadcast %16 : vector<16x1xf32> to vector<16x128xf32>
    %25 = arith.subf %12, %24 : vector<16x128xf32>
    %cst_16 = arith.constant 9.99999974E-6 : f32
    %26 = vector.broadcast %cst_16 : f32 to vector<16x1xf32>
    %27 = arith.addf %23, %26 : vector<16x1xf32>
    %28 = math.rsqrt %27 : vector<16x1xf32>
    %29 = vector.broadcast %28 : vector<16x1xf32> to vector<16x128xf32>
    %30 = arith.mulf %25, %29 : vector<16x128xf32>
    %c0_17 = arith.constant 0 : index
    %31 = memref.load %arg9[%c0_17] : memref<2xf32, #tpu.memory_space<smem>>
    %cst_18 = arith.constant 0.000000e+00 : f32
    %32 = vector.broadcast %cst_18 : f32 to vector<16x128xf32>
    %33 = arith.cmpf oge, %30, %32 : vector<16x128xf32>
    %34 = vector.broadcast %31 : f32 to vector<16x128xf32>
    %35 = arith.mulf %34, %30 : vector<16x128xf32>
    %36 = arith.select %33, %30, %35 : vector<16x128xi1>, vector<16x128xf32>
    %c0_19 = arith.constant 0 : index
    %c0_20 = arith.constant 0 : index
    %37 = vector.load %arg6[%c0_19, %c0_20] : memref<8x16xbf16, #tpu.memory_space<vmem>>, vector<8x16xbf16>
    %c0_21 = arith.constant 0 : index
    %c0_22 = arith.constant 0 : index
    %38 = vector.load %arg7[%c0_21, %c0_22] : memref<8x16xbf16, #tpu.memory_space<vmem>>, vector<8x16xbf16>
    %c0_23 = arith.constant 0 : index
    %c0_24 = arith.constant 0 : index
    %39 = vector.load %arg8[%c0_23, %c0_24] : memref<8x128xf32, #tpu.memory_space<vmem>>, vector<8x128xf32>
    %40 = arith.truncf %36 : vector<16x128xf32> to vector<16x128xbf16>
    %cst_25 = arith.constant dense<0.000000e+00> : vector<8x128xf32>
    %41 = tpu.matmul %37, %40, %cst_25 {dimension_numbers = #tpu.dot_dimension_numbers<[1], [0], [0], [1], [0, 0, 1, 1], [], []>} : vector<8x16xbf16>, vector<16x128xbf16>, vector<8x128xf32> -> vector<8x128xf32>
    %cst_26 = arith.constant dense<0.000000e+00> : vector<8x128xf32>
    %42 = tpu.matmul %38, %40, %cst_26 {dimension_numbers = #tpu.dot_dimension_numbers<[1], [0], [0], [1], [0, 0, 1, 1], [], []>} : vector<8x16xbf16>, vector<16x128xbf16>, vector<8x128xf32> -> vector<8x128xf32>
    %43 = arith.truncf %42 : vector<8x128xf32> to vector<8x128xbf16>
    %cst_27 = arith.constant dense<0.000000e+00> : vector<8x128xf32>
    %44 = tpu.matmul %43, %0, %cst_27 {dimension_numbers = #tpu.dot_dimension_numbers<[1], [0], [0], [1], [0, 0, 1, 1], [], []>} : vector<8x128xbf16>, vector<128x128xbf16>, vector<8x128xf32> -> vector<8x128xf32>
    %45 = arith.addf %41, %44 : vector<8x128xf32>
    %46 = arith.addf %45, %39 : vector<8x128xf32>
    %cst_28 = arith.constant dense<0.000000e+00> : vector<8xf32>
    %47 = vector.multi_reduction <add>, %46, %cst_28 [1] : vector<8x128xf32> to vector<8xf32>
    %48 = vector.shape_cast %47 : vector<8xf32> to vector<8x1xf32>
    %cst_29 = arith.constant 1.280000e+02 : f32
    %49 = vector.broadcast %cst_29 : f32 to vector<8x1xf32>
    %50 = arith.divf %48, %49 : vector<8x1xf32>
    %51 = arith.mulf %46, %46 : vector<8x128xf32>
    %cst_30 = arith.constant dense<0.000000e+00> : vector<8xf32>
    %52 = vector.multi_reduction <add>, %51, %cst_30 [1] : vector<8x128xf32> to vector<8xf32>
    %53 = vector.shape_cast %52 : vector<8xf32> to vector<8x1xf32>
    %cst_31 = arith.constant 1.280000e+02 : f32
    %54 = vector.broadcast %cst_31 : f32 to vector<8x1xf32>
    %55 = arith.divf %53, %54 : vector<8x1xf32>
    %56 = arith.mulf %50, %50 : vector<8x1xf32>
    %57 = arith.subf %55, %56 : vector<8x1xf32>
    %58 = vector.broadcast %50 : vector<8x1xf32> to vector<8x128xf32>
    %59 = arith.subf %46, %58 : vector<8x128xf32>
    %cst_32 = arith.constant 9.99999974E-6 : f32
    %60 = vector.broadcast %cst_32 : f32 to vector<8x1xf32>
    %61 = arith.addf %57, %60 : vector<8x1xf32>
    %62 = math.rsqrt %61 : vector<8x1xf32>
    %63 = vector.broadcast %62 : vector<8x1xf32> to vector<8x128xf32>
    %64 = arith.mulf %59, %63 : vector<8x128xf32>
    %cst_33 = arith.constant dense<0.000000e+00> : vector<8xf32>
    %65 = vector.multi_reduction <add>, %2, %cst_33 [1] : vector<8x128xf32> to vector<8xf32>
    %66 = vector.shape_cast %65 : vector<8xf32> to vector<8x1xf32>
    %cst_34 = arith.constant 1.280000e+02 : f32
    %67 = vector.broadcast %cst_34 : f32 to vector<8x1xf32>
    %68 = arith.divf %66, %67 : vector<8x1xf32>
    %69 = arith.mulf %2, %2 : vector<8x128xf32>
    %cst_35 = arith.constant dense<0.000000e+00> : vector<8xf32>
    %70 = vector.multi_reduction <add>, %69, %cst_35 [1] : vector<8x128xf32> to vector<8xf32>
    %71 = vector.shape_cast %70 : vector<8xf32> to vector<8x1xf32>
    %cst_36 = arith.constant 1.280000e+02 : f32
    %72 = vector.broadcast %cst_36 : f32 to vector<8x1xf32>
    %73 = arith.divf %71, %72 : vector<8x1xf32>
    %74 = arith.mulf %68, %68 : vector<8x1xf32>
    %75 = arith.subf %73, %74 : vector<8x1xf32>
    %76 = vector.broadcast %68 : vector<8x1xf32> to vector<8x128xf32>
    %77 = arith.subf %2, %76 : vector<8x128xf32>
    %cst_37 = arith.constant 9.99999974E-6 : f32
    %78 = vector.broadcast %cst_37 : f32 to vector<8x1xf32>
    %79 = arith.addf %75, %78 : vector<8x1xf32>
    %80 = math.rsqrt %79 : vector<8x1xf32>
    %81 = vector.broadcast %80 : vector<8x1xf32> to vector<8x128xf32>
    %82 = arith.mulf %77, %81 : vector<8x128xf32>
    %83 = arith.addf %64, %82 : vector<8x128xf32>
    %c1 = arith.constant 1 : index
    %84 = memref.load %arg9[%c1] : memref<2xf32, #tpu.memory_space<smem>>
    %cst_38 = arith.constant 0.000000e+00 : f32
    %85 = vector.broadcast %cst_38 : f32 to vector<8x128xf32>
    %86 = arith.cmpf oge, %83, %85 : vector<8x128xf32>
    %87 = vector.broadcast %84 : f32 to vector<8x128xf32>
    %88 = arith.mulf %87, %83 : vector<8x128xf32>
    %89 = arith.select %86, %83, %88 : vector<8x128xi1>, vector<8x128xf32>
    %c0_39 = arith.constant 0 : index
    %c0_40 = arith.constant 0 : index
    %c0_41 = arith.constant 0 : index
    %90 = vector.load %arg10[%c0_39, %c0_40, %c0_41] : memref<1x8x128xf32, #tpu.memory_space<vmem>>, vector<1x8x128xf32>
    %91 = vector.shape_cast %90 : vector<1x8x128xf32> to vector<8x128xf32>
    %92 = vector.shape_cast %89 : vector<8x128xf32> to vector<1x8x128xf32>
    tpu.vector_store %arg10[%c0_39, %c0_40, %c0_41], %92 {strides = array<i32>} : memref<1x8x128xf32, #tpu.memory_space<vmem>>, vector<1x8x128xf32>,
    return
  }
  func.func @transform_0(%arg0: i32) -> (i32, i32, i32) {
    %c0_i32 = arith.constant 0 : i32
    %c0_i32_0 = arith.constant 0 : i32
    %c0_i32_1 = arith.constant 0 : i32
    return %arg0, %c0_i32, %c0_i32_0 : i32, i32, i32
  }
  func.func @transform_1(%arg0: i32) -> (i32, i32) {
    %c0_i32 = arith.constant 0 : i32
    %c0_i32_0 = arith.constant 0 : i32
    %c0_i32_1 = arith.constant 0 : i32
    return %c0_i32, %c0_i32_0 : i32, i32
  }
  func.func @transform_2(%arg0: i32) -> (i32, i32) {
    %c0_i32 = arith.constant 0 : i32
    %c0_i32_0 = arith.constant 0 : i32
    %c0_i32_1 = arith.constant 0 : i32
    return %c0_i32, %c0_i32_0 : i32, i32
  }
  func.func @transform_3(%arg0: i32) -> (i32, i32) {
    %c0_i32 = arith.constant 0 : i32
    %c0_i32_0 = arith.constant 0 : i32
    %c0_i32_1 = arith.constant 0 : i32
    return %c0_i32, %c0_i32_0 : i32, i32
  }
  func.func @transform_4(%arg0: i32) -> (i32, i32) {
    %c0_i32 = arith.constant 0 : i32
    %c0_i32_0 = arith.constant 0 : i32
    %c0_i32_1 = arith.constant 0 : i32
    return %c0_i32, %c0_i32_0 : i32, i32
  }
  func.func @transform_5(%arg0: i32) -> (i32, i32) {
    %c0_i32 = arith.constant 0 : i32
    %c0_i32_0 = arith.constant 0 : i32
    %c0_i32_1 = arith.constant 0 : i32
    return %c0_i32, %c0_i32_0 : i32, i32
  }
  func.func @transform_6(%arg0: i32) -> (i32, i32) {
    %c0_i32 = arith.constant 0 : i32
    %c0_i32_0 = arith.constant 0 : i32
    %c0_i32_1 = arith.constant 0 : i32
    return %c0_i32, %c0_i32_0 : i32, i32
  }
  func.func @transform_7(%arg0: i32) -> (i32, i32) {
    %c0_i32 = arith.constant 0 : i32
    %c0_i32_0 = arith.constant 0 : i32
    %c0_i32_1 = arith.constant 0 : i32
    return %c0_i32, %c0_i32_0 : i32, i32
  }
  func.func @transform_8(%arg0: i32) -> i32 {
    %c0_i32 = arith.constant 0 : i32
    %c0_i32_0 = arith.constant 0 : i32
    return %c0_i32 : i32
  }
  func.func @transform_9(%arg0: i32) -> (i32, i32, i32) {
    %c0_i32 = arith.constant 0 : i32
    %c0_i32_0 = arith.constant 0 : i32
    %c0_i32_1 = arith.constant 0 : i32
    return %arg0, %c0_i32, %c0_i32_0 : i32, i32, i32
  }
}

</mosaic_0001>

<bundles_post_ra>
// kernel: forward.1
= control target key start
LH: loop header
LB: loop body
LE: loop exit
PB: predicated region body
PF: predicated region fallthrough
CT: control target
= control target key end

     0   :  { %14 = vsyncpa [#allocation3], 0  ;;  %s1620_s0 = inlined_call_operand.vmem [shape: f32[2,8,128], index: 0, kind: input, shape index: {}]   ;;  %s1621_s1 = inlined_call_operand.hbm [shape: bf16[128,128], index: 1, kind: input, shape index: {}]   ;;  %s1622_s2 = inlined_call_operand.vmem [shape: bf16[16,8], index: 2, kind: input, shape index: {}]   ;;  %s1623_s3 = inlined_call_operand.vmem [shape: bf16[16,8], index: 3, kind: input, shape index: {}]   ;;  %s1624_s4 = inlined_call_operand.hbm [shape: f32[16,128], index: 4, kind: input, shape index: {}]   ;;  %s1625_s5 = inlined_call_operand.vmem [shape: bf16[8,16], index: 5, kind: input, shape index: {}]   ;;  %s1626_s6 = inlined_call_operand.hbm [shape: bf16[8,16], index: 6, kind: input, shape index: {}]   ;;  %s1627_s7 = inlined_call_operand.vmem [shape: f32[8,128], index: 7, kind: input, shape index: {}]   ;;  %s1628_s8 = inlined_call_operand.vmem [shape: f32[2], index: 8, kind: input, shape index: {}]   ;;  %s1629_s9 = inlined_call_operand.hbm [shape: f32[2,8,128], index: 9, kind: output, shape index: {}]  }
   0x1   :  { %15 = vsyncpa [#allocation7], 0 }
   0x2   :  { %16 = vsyncpa [#allocation5], 0 }
   0x3   :  { %17 = vsyncpa [#allocation4], 0 }
   0x4   :  { %19 = vsyncpa [#allocation4 + $0x1], 0  ;;  %s1378_s30 = smov 0   ;;  %s1380_s10 = smov 0  }
   0x5   :  { %s1382_s11 = smov 0   ;;  %s1384_s12 = smov 0  }
   0x6 LB: > { %s1399_s13 = sadd.s32 4294967295, %s1315_s12   ;;  %s923_s14 = sadd.s32 4294967294, %s1315_s12   ;;  %s1315_s12 = sphi %s1384_s12, %s1651_s12   ;;  %s1311_s11 = sphi %s1382_s11, %s1650_s11   ;;  %s1307_s10 = sphi %s1380_s10, %s1649_s10   ;;  %s1303_s30 = sphi %s1378_s30, %s1648_s30  }
   0x7   : > { %s1403_s15 = sadd.s32 1, %s1315_s12   ;;  %s226_s16 = sadd.s32 1, %s1311_s11 }
   0x8   : > { %s223_s17 = ssub.s32 %s1315_s12, %s1403_s15  ;;  %p236_p0 = scmp.ne.s32.totalorder %s1311_s11, %s1307_s10 }
   0x9   : > { %p224_p1 = scmp.eq.s32.totalorder %s223_s17, 0  ;;  %p237_p2 = scmp.eq.s32.totalorder %s1399_s13, 1 }
   0xa   : > { %p242_p3 = scmp.ne.s32.totalorder %s1307_s10, %s1303_s30  ;;  %p243_p4 = scmp.eq.s32.totalorder %s923_s14, 1 }
   0xb   : > { %s1414_s18 = scalar_select %p224_p1, %s1311_s11, %s226_s16  }
   0xc   : > { %p1416_p5 = por %p237_p2, %p236_p0  ;;  %p1420_p6 = por %p243_p4, %p242_p3 }
   0xd   : > { %1633 = sst [smem:[#allocation15_spill]] %s1414_s18  ;;  %p924_p7 = scmp.ge.s32.totalorder %s1315_s12, 1 }
   0xe   : > { %s1634_s19 = scalar_select %p1416_p5, 1, 0 }
   0xf   : > { %s1635_s20 = scalar_select %p1420_p6, 1, 0 }
  0x10   : > { %p250_p8 = scmp.lt.s32.totalorder %s1315_s12, 3  ;;  %p1630_p9 = scmp.eq.s32.totalorder %s1399_s13, 0 }
  0x11   : > { %s1317_s22 = smov [#allocation6]   ;;  %s1318_s25 = smov [#allocation2]  }
  0x12   : > { %p1427_p10 = pnand %p924_p7, %p250_p8  ;;  %s281_s23 = sshll.u32 %s1317_s22, 4  ;;  %s282_s23 = int_to_ptr.vmem [resolvable:$true] %s281_s23 }
  0x13   : > { %s262_s26 = sshll.u32 %s1318_s25, 4  ;;  %s1161_s27 = scalar_lea.vmem %s282_s23, 256  ;;  %s263_s26 = int_to_ptr.vmem [resolvable:$true] %s262_s26 }
  0x14   : > { %s1636_s21 = scalar_select %p1427_p10, 1, 0 }
  0x15   : > { %p1064_p11 = pneg %p1427_p10  ;;  %p1162_p0 = scmp.ne.s32.totalorder %s282_s23, %s1161_s27 }
  0x16   : > { %p1169_p3 = scmp.lt.s32.totalorder %s282_s23, %s282_s23  ;;  %p1170_p4 = scmp.lt.s32.totalorder %s1161_s27, %s1161_s27 }
  0x17   : > { %p1435_p12 = pnand %p1630_p9, %p1064_p11 }
  0x18   : > { %p1171_p7 = por %p1170_p4, %p1169_p3 }
  0x19   : > { %p1152_p13 = pneg %p1435_p12 }
  0x1b   : > { %p1164_p1 = pnand %p1162_p0, %p1152_p13 }
  0x1d   : > { %p1165_p2 = pneg %p1164_p1 }
  0x1f   : > { %p1172_p8 = pnand %p1171_p7, %p1165_p2 }
  0x21   : > { %1175 = shalt.err (!%p1172_p8)
}
  0x22   : > { %s1319_s28 = smov 128   ;;  %s1320_s29 = smov 8  }
  0x23   : > { %1070 = dma.hbm_to_vmem [thread:$0]  (!%p1435_p12), %s1624_s4, 256, %s282_s23, [#allocation7], %s1319_s28, %s1319_s28, %s1320_s29  }
  0x24   : > { %s1187_s17 = scalar_lea.vmem %s263_s26, 1024  ;;  %p1195_p9 = scmp.lt.s32.totalorder %s263_s26, %s263_s26 }
  0x25   : > { %p1188_p11 = scmp.ne.s32.totalorder %s263_s26, %s1187_s17  ;;  %p1196_p6 = scmp.lt.s32.totalorder %s1187_s17, %s1187_s17 }
  0x27   : > { %p1190_p0 = pnand %p1188_p11, %p1152_p13  ;;  %p1197_p3 = por %p1196_p6, %p1195_p9 }
  0x29   : > { %p1191_p1 = pneg %p1190_p0 }
  0x2b   : > { %p1198_p2 = pnand %p1197_p3, %p1191_p1 }
  0x2d   : > { %1201 = shalt.err (!%p1198_p2)
}
  0x2e   : > { %s1321_s22 = smov 64   ;;  %s1322_s25 = smov 4  }
  0x2f   : > { %1067 = dma.hbm_to_vmem [thread:$0]  (!%p1435_p12), %s1621_s1, 1024, %s263_s26, [#allocation3], %s1321_s22, %s1321_s22, %s1322_s25  }
  0x30   : > { %s312_s29 = sshll.u32 %s1628_s8, 4  ;;  %s1323_s14 = smov [#allocation8]   ;;  %s313_s29 = int_to_ptr.vmem [resolvable:$true] %s312_s29 }
  0x31   : > { %s298_s16 = sshll.u32 %s1323_s14, 4  ;;  %s299_s16 = int_to_ptr.vmem [resolvable:$true] %s298_s16 }
  0x32   : > { %s1213_s17 = scalar_lea.vmem %s299_s16, 64  ;;  %p1221_p7 = scmp.lt.s32.totalorder %s299_s16, %s299_s16 }
  0x33   : > { %p1214_p6 = scmp.ne.s32.totalorder %s299_s16, %s1213_s17  ;;  %p1222_p8 = scmp.lt.s32.totalorder %s1213_s17, %s1213_s17 }
  0x35   : > { %p1216_p9 = pnand %p1214_p6, %p1152_p13  ;;  %p1223_p11 = por %p1222_p8, %p1221_p7 }
  0x37   : > { %p1217_p4 = pneg %p1216_p9 }
  0x39   : > { %p1224_p0 = pnand %p1223_p11, %p1217_p4 }
  0x3b   : > { %1227 = shalt.err (!%p1224_p0)
}
  0x3c   : > { %1073 = dma.hbm_to_vmem [thread:$0]  (!%p1435_p12), %s1626_s6, 64, %s299_s16, [#allocation7]  }
  0x3d   : > { %s1228_s22 = scalar_lea.vmem %s313_s29, 16  ;;  %p1236_p6 = scmp.lt.s32.totalorder %s313_s29, %s313_s29 }
  0x3e   : > { %p1229_p1 = scmp.ne.s32.totalorder %s313_s29, %s1228_s22  ;;  %p1237_p9 = scmp.lt.s32.totalorder %s1228_s22, %s1228_s22 }
  0x40   : > { %p1231_p3 = pnand %p1229_p1, %p1152_p13  ;;  %p1238_p5 = por %p1237_p9, %p1236_p6 }
  0x42   : > { %p1232_p2 = pneg %p1231_p3 }
  0x44   : > { %p1239_p10 = pnand %p1238_p5, %p1232_p2 }
  0x46   : > { %1242 = shalt.err (!%p1239_p10)
}
  0x47   : > { %s1324_s25 = smov [#allocation9]   ;;  %p1638_p4 = scmp.ne.s32.totalorder %s1636_s21, 0 }
  0x48   : > { %1076 = dma.vmem_to_smem (!%p1435_p12), %s313_s29, 16, %s1324_s25, [#allocation5]  }
  0x49   : > { %332 = sbr.rel (%p1638_p4) target bundleno = 1265 (0x4f1), region = 56  ;;  %p1639_p7 = scmp.eq.s32.totalorder (!%p1638_p4), %s1399_s13, 0 }
  0x4e   : > { %1286 = dma.done.wait (%p1639_p7), [#allocation3], 1024   ;;  %p1640_p8 = pmov %p1639_p7 }
  0x4f   : > { %p1641_p13 = pmov %p1639_p7 }
  0x50   : > { %1288 = vsyncadd (%p1640_p8), [#allocation3], 4294966272 }
  0x51   : > { %1290 = dma.done.wait (%p1641_p13), [#allocation7], 320   ;;  %p1642_p11 = pmov %p1639_p7 }
  0x52   : > { %p1643_p5 = pmov %p1639_p7 }
  0x53   : > { %1292 = vsyncadd (%p1642_p11), [#allocation7], 4294966976 }
  0x54   : > { %1294 = dma.done.wait (%p1643_p5), [#allocation5], 16   ;;  %p1644_p10 = pmov %p1643_p5 }
  0x56   : > { %1296 = vsyncadd (%p1644_p10), [#allocation5], 4294967280 }
  0x57   : > { %350 = sfence }
  0x58   : > { %v1487_v0 = vld [vmem:[#allocation2 + $0x38] sm:$0xff]   ;;  %v1325_v1 = vmov 0.0   ;;  %v1492_v2 = vld [vmem:[#allocation2 + $0x30] sm:$0xff]   ;;  %vm1326_vm0 = vmmov 0   ;;  %p380_p12 = scmp.lt.s32.totalorder %s1399_s13, 1  ;;  %v1502_v3 = vld [vmem:[#allocation2 + $0x28] sm:$0xff]  }
  0x59   : > { %982 = vmatprep.subr.bf16.mxu0 %v1325_v1  ;;  %1008 = vmatprep.subr.bf16.mxu1 %v1325_v1  ;;  %vm507_vm1 = vcmask 1043456   ;;  %v1513_v6 = vld [vmem:[#allocation2 + $0x20] sm:$0xff]   ;;  %v1519_v8 = vld [vmem:[#allocation2 + $0x18] sm:$0xff]   ;;  %v1523_v9 = vld [vmem:[#allocation2 + $0x10] sm:$0xff]   ;;  %vm503_vm2 = vcmask 64512   ;;  %s633_s18 = sld [smem:[#allocation9]] }
  0x5a   : > { %983 = vmatpush3.bf16.msra.mxu0 %v1487_v0  ;;  %998 = vmatprep.mubr.msk.bf16.mxu0 %vm1326_vm0, %v1325_v1  ;;  %s381_s21 = scalar_select %p380_p12, %s1399_s13, 1  ;;  %v1527_v10 = vld [vmem:[#allocation2 + $0x8] sm:$0xff]   ;;  %v1531_v11 = vld [vmem:[#allocation2] sm:$0xff]   ;;  %v642_v62 = vld [vmem:[#allocation8] sm:$0xf]  ;;  %vm645_vm5 = vcmask 130048  }
  0x5b   : > { %984 = vmatprep.subr.bf16.mxu0 %v1325_v1  ;;  %1010 = vmatprep.mubr.msk.bf16.mxu1 %vm1326_vm0, %v1325_v1  ;;  %v1140_v12 = vld [vmem:[%s1622_s2] sm:$0xff]   ;;  %v407_v29 = vld [vmem:[#allocation6 + $0x8] sm:$0xff]  ;;  %s951_s27 = sld [smem:[#allocation9 + $0x1]]  ;;  %p1645_p1 = scmp.ne.s32.totalorder %s1634_s19, 0 }
  0x5c   : > { %s936_s24 = sshll.u32 %s381_s21, 3  ;;  %v1141_v17 = vld [vmem:[%s1623_s3] sm:$0xff]   ;;  %s1327_s25 = smov [#allocation10]  }
  0x5d   : > { %s383_s28 = scalar_lea.vmem %s1620_s0, %s936_s24  ;;  %v406_v24 = vld [vmem:[#allocation6] sm:$0xff]  ;;  %s377_s24 = sand.u32 1, %s1307_s10  }
  0x5e   : > { %985 = vmatpush3.bf16.msra.mxu0 %v1492_v2  ;;  %v1508_v4 = vld [vmem:[%s383_s28] sm:$0xff]  ;;  %s935_s23 = sshll.u32 %s377_s24, 3  ;;  %s953_s28 = sshll.u32 %s1399_s13, 7 }
  0x5f   : > { %986 = vmatprep.subr.bf16.mxu0 %v1325_v1  ;;  %v408_v5 = vpack.c.bf16 %v1508_v4, %v1508_v4  ;;  %v636_v53 = vstv %s633_s18  ;;  %v641_v63 = vld [vmem:[%s1625_s5] sm:$0xf]  ;;  %s379_s29 = scalar_lea.vmem [#allocation10], %s935_s23  ;;  %s1585_s18 = scalar_lea.hbm %s1629_s9, %s953_s28 }
  0x60   : > { %s821_s14 = sshll.u32 %s379_s29, 4  ;;  %s808_s26 = scalar_lea.sflag [#allocation4], %s377_s24  ;;  %s822_s14 = int_to_ptr.vmem [resolvable:$true] %s821_s14 }
  0x61   : > { %v561_v7 = vsel %vm507_vm1, %v408_v5, 0  ;;  %s1243_s22 = scalar_lea.vmem %s822_s14, 128  ;;  %s1247_s13 = sshll.u32 %s1327_s25, 4  ;;  %s1248_s13 = int_to_ptr.vmem [resolvable:$false] %s1247_s13 }
  0x62   : > { %987 = vmatpush3.bf16.msra.mxu0 %v1502_v3  ;;  %1009 = vmatpush3.bf16.msra.mxu1 %v561_v7  ;;  %p1244_p0 = scmp.ne.s32.totalorder %s822_s14, %s1243_s22  ;;  %s1249_s21 = scalar_lea.vmem %s1248_s13, 256 }
  0x63   : > { %988 = vmatprep.subr.bf16.mxu0 %v1325_v1  ;;  %1014 = vmatprep.subr.bf16.mxu1 %v1325_v1  ;;  %p1250_p6 = scmp.lt.s32.totalorder %s822_s14, %s1248_s13  ;;  %p1251_p9 = scmp.lt.s32.totalorder %s1249_s21, %s1243_s22 }
  0x64   : > { %p1245_p3 = pnand %p1244_p0, %p1645_p1 }
  0x65   : > { %1011 = vmatmul.mubr.msk.bf16.vlgmr.msra.gmra.mxu1 %vm503_vm2, %v1140_v12  ;;  %p1252_p4 = por %p1251_p9, %p1250_p6 }
  0x66   : > { %989 = vmatpush3.bf16.msra.mxu0 %v1513_v6  ;;  %1016 = vmatprep.mubr.msk.bf16.mxu1 %vm1326_vm0, %v1325_v1  ;;  %p1246_p2 = pneg %p1245_p3 }
  0x67   : > { %990 = vmatprep.subr.bf16.mxu0 %v1325_v1 }
  0x68   : > { %p1253_p7 = pnand %p1252_p4, %p1246_p2 }
  0x6a   : > { %991 = vmatpush3.bf16.msra.mxu0 %v1519_v8 }
  0x6b   : > { %992 = vmatprep.subr.bf16.mxu0 %v1325_v1 }
  0x6e   : > { %993 = vmatpush3.bf16.msra.mxu0 %v1523_v9 }
  0x6f   : > { %994 = vmatprep.subr.bf16.mxu0 %v1325_v1 }
  0x72   : > { %995 = vmatpush3.bf16.msra.mxu0 %v1527_v10 }
  0x73   : > { %996 = vmatprep.subr.bf16.mxu0 %v1325_v1 }
  0x76   : > { %997 = vmatpush3.bf16.msra.mxu0 %v1531_v11 }
  0x77   : > { %1002 = vmatprep.subr.bf16.mxu0 %v1325_v1 }
  0x79   : > { %999 = vmatmul.mubr.bf16.vlgmr.msra.gmra.mxu0 %v408_v5 }
  0x7a   : > { %1004 = vmatprep.mubr.msk.bf16.mxu0 %vm1326_vm0, %v1325_v1 }
 0x125   : > { %v597_v20 = vpop.f32.mrf.mxu1 }
 0x127   : > { %v1012_v21 = vpop.f32.mrf.mxu1 }
 0x129   : > { %v600_v22 = vpop.f32.mrf.mxu1 }
 0x12b   : > { %v1013_v23 = vpop.f32.mrf.mxu1 }
 0x139   : > { %v491_v13 = vpop.f32.mrf.mxu0 }
 0x13a   : > { %v497_v14 = vpack.c.bf16 %v491_v13, %v491_v13 }
 0x13b   : > { %v1000_v15 = vpop.f32.mrf.mxu0 }
 0x13c   : > { %v509_v16 = vsel %vm507_vm1, %v497_v14, 0 }
 0x13d   : > { %v494_v18 = vpop.f32.mrf.mxu0  ;;  %1003 = vmatpush3.bf16.msra.mxu0 %v509_v16 }
 0x13e   : > { %1040 = vmatprep.subr.bf16.mxu0 %v1325_v1 }
 0x13f   : > { %v1001_v19 = vpop.f32.mrf.mxu0 }
 0x140   : > { %1005 = vmatmul.mubr.msk.bf16.vlgmr.msra.gmra.mxu0 %vm503_vm2, %v1141_v17 }
 0x141   : > { %1042 = vmatprep.mubr.msk.bf16.mxu0 %vm1326_vm0, %v1325_v1 }
 0x200   : > { %v545_v25 = vpop.f32.mrf.mxu0 }
 0x201   : > { %v598_v26 = vadd.f32 %v597_v20, %v545_v25 }
 0x202   : > { %v1006_v27 = vpop.f32.mrf.mxu0 }
 0x203   : > { %v604_v28 = vadd.f32 %v598_v26, %v406_v24 }
 0x204   : > { %v548_v30 = vpop.f32.mrf.mxu0 }
 0x205   : > { %v601_v31 = vadd.f32 %v600_v22, %v548_v30  ;;  %606 = vadd.xlane.f32.xlu0 %v604_v28  ;;  %v613_v32 = vmul.f32 %v604_v28, %v604_v28 }
 0x206   : > { %v1007_v33 = vpop.f32.mrf.mxu0 }
 0x207   : > { %v605_v34 = vadd.f32 %v601_v31, %v407_v29  ;;  %615 = vadd.xlane.f32.xlu1 %v613_v32 }
 0x209   : > { %608 = vadd.xlane.f32.xlu0 %v605_v34  ;;  %v614_v35 = vmul.f32 %v605_v34, %v605_v34 }
 0x20b   : > { %617 = vadd.xlane.f32.xlu1 %v614_v35 }
 0x20f   : > { %787 = vadd.xlane.f32.xlu1 %v1508_v4 }
 0x28e   : > { %v607_v36 = vpop.xlane.xlu0 %606 }
 0x28f   : > { %v611_v37 = vmul.f32 0.0078125, %v607_v36 }
 0x290   : > { %v616_v38 = vpop.xlane.xlu1 %615 }
 0x291   : > { %v621_v39 = vmul.f32 %v611_v37, %v611_v37  ;;  %v619_v40 = vmul.f32 0.0078125, %v616_v38  ;;  %v625_v50 = vsub.f32 %v604_v28, %v611_v37 }
 0x292   : > { %v609_v41 = vpop.xlane.xlu0 %608 }
 0x293   : > { %v623_v42 = vsub.f32 %v619_v40, %v621_v39  ;;  %v612_v43 = vmul.f32 0.0078125, %v609_v41  ;;  %v803_v39 = vstv %s951_s27 }
 0x294   : > { %v618_v44 = vpop.xlane.xlu1 %617 }
 0x295   : > { %v627_v45 = vadd.f32 1e-05, %v623_v42  ;;  %v622_v46 = vmul.f32 %v612_v43, %v612_v43  ;;  %v620_v47 = vmul.f32 0.0078125, %v618_v44  ;;  %v626_v54 = vsub.f32 %v605_v34, %v612_v43 }
 0x297   : > { %1142 = vrsqrt.f32 %v627_v45  ;;  %v624_v48 = vsub.f32 %v620_v47, %v622_v46 }
 0x298   : > { %v788_v19 = vpop.xlane.xlu1 %787 }
 0x299   : > { %v628_v49 = vadd.f32 1e-05, %v624_v48  ;;  %v789_v20 = vmul.f32 0.0078125, %v788_v19 }
 0x29b   : > { %1144 = vrsqrt.f32 %v628_v49  ;;  %v794_v22 = vmul.f32 %v789_v20, %v789_v20  ;;  %v796_v33 = vsub.f32 %v1508_v4, %v789_v20 }
 0x2a4   : > { %v1143_v51 = vpop.eup %1142 }
 0x2a5   : > { %v631_v52 = vmul.f32 %v1143_v51, %v625_v50 }
 0x2a7   : > { %v637_v57 = vmul.f32 %v636_v53, %v631_v52  ;;  %vm634_vm3 = vcmp.ge.f32.partialorder %v631_v52, 0.0 }
 0x2a8   : > { %v1145_v55 = vpop.eup %1144 }
 0x2a9   : > { %v632_v56 = vmul.f32 %v1145_v55, %v626_v54  ;;  %v639_v59 = vsel %vm634_vm3, %v631_v52, %v637_v57 }
 0x2ab   : > { %vm635_vm4 = vcmp.ge.f32.partialorder %v632_v56, 0.0  ;;  %v638_v58 = vmul.f32 %v636_v53, %v632_v56 }
 0x2ad   : > { %v640_v60 = vsel %vm635_vm4, %v632_v56, %v638_v58 }
 0x2ae   : > { %v644_v61 = vpack.c.bf16 %v640_v60, %v639_v59 }
 0x2b0   : > { %1015 = vmatpush3.bf16.msra.mxu1 %v644_v61  ;;  %1041 = vmatpush3.bf16.msra.mxu0 %v644_v61 }
 0x2b1   : > { %1020 = vmatprep.subr.bf16.mxu1 %v1325_v1 }
 0x2b3   : > { %1017 = vmatmul.mubr.msk.bf16.vlgmr.msra.gmra.mxu1 %vm645_vm5, %v642_v62  ;;  %1043 = vmatmul.mubr.msk.bf16.vlgmr.msra.gmra.mxu0 %vm645_vm5, %v641_v63 }
 0x2b4   : > { %1021 = vmatpush3.bf16.msra.mxu1 %v1487_v0  ;;  %1036 = vmatprep.mubr.msk.bf16.mxu1 %vm1326_vm0, %v1325_v1  ;;  %v790_v0 = vmul.f32 %v1508_v4, %v1508_v4 }
 0x2b5   : > { %1022 = vmatprep.subr.bf16.mxu1 %v1325_v1 }
 0x2b6   : > { %791 = vadd.xlane.f32.xlu1 %v790_v0 }
 0x2b8   : > { %1023 = vmatpush3.bf16.msra.mxu1 %v1492_v2 }
 0x2b9   : > { %1024 = vmatprep.subr.bf16.mxu1 %v1325_v1 }
 0x2bc   : > { %1025 = vmatpush3.bf16.msra.mxu1 %v1502_v3 }
 0x2bd   : > { %1026 = vmatprep.subr.bf16.mxu1 %v1325_v1 }
 0x2c0   : > { %1027 = vmatpush3.bf16.msra.mxu1 %v1513_v6 }
 0x2c1   : > { %1028 = vmatprep.subr.bf16.mxu1 %v1325_v1 }
 0x2c4   : > { %1029 = vmatpush3.bf16.msra.mxu1 %v1519_v8 }
 0x2c5   : > { %1030 = vmatprep.subr.bf16.mxu1 %v1325_v1 }
 0x2c8   : > { %1031 = vmatpush3.bf16.msra.mxu1 %v1523_v9 }
 0x2c9   : > { %1032 = vmatprep.subr.bf16.mxu1 %v1325_v1 }
 0x2cc   : > { %1033 = vmatpush3.bf16.msra.mxu1 %v1527_v10 }
 0x2cd   : > { %1034 = vmatprep.subr.bf16.mxu1 %v1325_v1 }
 0x2d0   : > { %1035 = vmatpush3.bf16.msra.mxu1 %v1531_v11  ;;  %v643_v11 = vld [vmem:[%s1627_s7] sm:$0xff] }
 0x33f   : > { %v792_v21 = vpop.xlane.xlu1 %791 }
 0x340   : > { %v793_v23 = vmul.f32 0.0078125, %v792_v21 }
 0x342   : > { %v795_v25 = vsub.f32 %v793_v23, %v794_v22 }
 0x344   : > { %v797_v28 = vadd.f32 1e-05, %v795_v25 }
 0x346   : > { %1146 = vrsqrt.f32 %v797_v28 }
 0x353   : > { %v1147_v34 = vpop.eup %1146 }
 0x354   : > { %v799_v38 = vmul.f32 %v1147_v34, %v796_v33 }
 0x373   : > { %v683_v2 = vpop.f32.mrf.mxu1  ;;  %v767_v8 = vpop.f32.mrf.mxu0 }
 0x374   : > { %v689_v3 = vpack.c.bf16 %v683_v2, %v683_v2 }
 0x375   : > { %v1018_v5 = vpop.f32.mrf.mxu1  ;;  %v1044_v1 = vpop.f32.mrf.mxu0 }
 0x376   : > { %1037 = vmatmul.mubr.bf16.vlgmr.msra.gmra.mxu1 %v689_v3 }
 0x377   : > { %v686_v6 = vpop.f32.mrf.mxu1  ;;  %v770_v9 = vpop.f32.mrf.mxu0 }
 0x379   : > { %v1019_v7 = vpop.f32.mrf.mxu1  ;;  %v1045_v10 = vpop.f32.mrf.mxu0 }
 0x436   : > { %v724_v12 = vpop.f32.mrf.mxu1 }
 0x437   : > { %v768_v13 = vadd.f32 %v767_v8, %v724_v12 }
 0x438   : > { %v1038_v14 = vpop.f32.mrf.mxu1 }
 0x439   : > { %v773_v15 = vadd.f32 %v768_v13, %v643_v11 }
 0x43a   : > { %v727_v16 = vpop.f32.mrf.mxu1 }
 0x43b   : > { %774 = vadd.xlane.f32.xlu0 %v773_v15  ;;  %v777_v18 = vmul.f32 %v773_v15, %v773_v15 }
 0x43c   : > { %v1039_v17 = vpop.f32.mrf.mxu1 }
 0x43f   : > { %778 = vadd.xlane.f32.xlu0 %v777_v18 }
 0x4c4   : > { %v775_v24 = vpop.xlane.xlu0 %774 }
 0x4c5   : > { %v776_v26 = vmul.f32 0.0078125, %v775_v24 }
 0x4c7   : > { %v781_v29 = vmul.f32 %v776_v26, %v776_v26  ;;  %v783_v35 = vsub.f32 %v773_v15, %v776_v26 }
 0x4c8   : > { %v779_v27 = vpop.xlane.xlu0 %778 }
 0x4c9   : > { %v780_v30 = vmul.f32 0.0078125, %v779_v27 }
 0x4cb   : > { %v782_v31 = vsub.f32 %v780_v30, %v781_v29 }
 0x4cd   : > { %v784_v32 = vadd.f32 1e-05, %v782_v31 }
 0x4cf   : > { %1148 = vrsqrt.f32 %v784_v32 }
 0x4dc   : > { %v1149_v36 = vpop.eup %1148 }
 0x4dd   : > { %v786_v37 = vmul.f32 %v1149_v36, %v783_v35 }
 0x4df   : > { %v800_v40 = vadd.f32 %v799_v38, %v786_v37 }
 0x4e1   : > { %vm802_vm6 = vcmp.ge.f32.partialorder %v800_v40, 0.0  ;;  %v804_v41 = vmul.f32 %v803_v39, %v800_v40 }
 0x4e3   : > { %v805_v4 = vsel %vm802_vm6, %v800_v40, %v804_v41 }
 0x4e4   : > { %806 = vst [vmem:[%s379_s29] sm:$0xff] %v805_v4 }
 0x4e5   : > { %1256 = shalt.err (!%p1253_p7)
}
 0x4e6   : > { %s1257_s27 = scalar_lea.hbm %s1585_s18, 128  ;;  %s1261_s28 = scalar_lea.hbm %s1629_s9, 256 }
 0x4e7   : > { %p1258_p8 = scmp.ne.s32.totalorder %s1585_s18, %s1257_s27  ;;  %p1262_p5 = scmp.lt.s32.totalorder %s1585_s18, %s1629_s9 }
 0x4e8   : > { %p1263_p10 = scmp.lt.s32.totalorder %s1261_s28, %s1257_s27 }
 0x4e9   : > { %p1259_p13 = pnand %p1258_p8, %p1645_p1 }
 0x4ea   : > { %p1264_p12 = por %p1263_p10, %p1262_p5 }
 0x4eb   : > { %p1260_p11 = pneg %p1259_p13 }
 0x4ed   : > { %p1265_p0 = pnand %p1264_p12, %p1260_p11 }
 0x4ef   : > { %1268 = shalt.err (!%p1265_p0)
}
 0x4f0   : > { %1062 = dma.vmem_to_hbm [thread:$0]  (%p1645_p1), %s822_s14, 128, %s1585_s18, %s808_s26  }
 0x4f1 PF: > { %p1089_p3 = scmp.ge.s32.totalorder %s1315_s12, 2  ;;  %s833_s17 = sand.u32 1, %s1303_s30  }
 0x4f2   : > { %p1646_p2 = scmp.ne.s32.totalorder %s1635_s20, 0  ;;  %s834_s22 = scalar_lea.sflag [#allocation4], %s833_s17 }
 0x4f4   : > { %p1078_p6 = pnand %p1089_p3, %p1646_p2 }
 0x4f6   : > { %p1079_p9 = pneg %p1078_p6 }
 0x4f8   : > { %1298 = dma.done.wait (%p1079_p9), %s834_s22, 128  }
 0x4f9   : > { %1300 = vsyncadd (%p1079_p9), %s834_s22, 4294967168  ;;  %s1647_s25 = sld [smem:[#allocation15_spill]]  ;;  %p22_p4 = scmp.ge.s32.totalorder %s1403_s15, 4  }
 0x4fa   : > { %s1648_s30 = smov %s1307_s10  ;;  %s1649_s10 = smov %s1311_s11 }
 0x4fb   : > { %s1651_s12 = smov %s1403_s15  ;;  %24 = sbr.rel (!%p22_p4) target bundleno = 6 (0x6), region = 109 }
 0x4ff   : > { %s1650_s11 = smov %s1647_s25 }
 0x500   :  { %839 = vsyncpa [#allocation3], 1 }
 0x501   :  { %841 = vsyncpa [#allocation3 + $0x1], 1 }
 0x502   :  { %842 = vsyncpa [#allocation7], 1 }
 0x503   :  { %843 = vsyncpa [#allocation4], 1 }
 0x504   :  { %845 = vsyncpa [#allocation4 + $0x1], 1 }
 0x505   :  { %846 = vsyncpa [#allocation5], 1 }
 0x506   :  { %848 = vsyncpa [#allocation5 + $0x1], 1 }

</bundles_post_ra>
